<compile_context>
chip_gen: v6e
topology: v6e:2x2x1
jax: 0.10.0
libtpu: 0.0.40
codegen_flags: <defaults>
</compile_context>

<pallas_src>
import functools

import jax
import jax.numpy as jnp
from jax import lax
from jax.experimental import pallas as pl
from jax.experimental.pallas import tpu as pltpu

HIGHEST = lax.Precision.HIGHEST
_VMEM_LIMIT = 48 * 1024 * 1024   # explicit scoped-VMEM budget (fits v7x's 64 MiB)


# ----------------------------- tile pickers ---------------------------------

def _pick_m_tile(M, cap=2048):
    """Largest multiple of 128 dividing M (<= cap); else the whole axis."""
    best = M
    t = 128
    while t <= min(cap, M):
        if M % t == 0:
            best = t
        t += 128
    return best


def _pick_row_tile(P, Q, target_px=4096):
    """Even divisor TH of P with TH*Q a multiple of 128 (lane-dense output block)."""
    cands = [t for t in range(2, P + 1, 2)
             if P % t == 0 and ((t * Q) % 128 == 0 or t == P)]
    for t in cands:
        if t * Q >= target_px:
            return t
    return cands[-1] if cands else P


# ----------------------------- Pallas kernels -------------------------------

def _deconv_kernel(xt_ref, w_ref, b_ref, o_ref):
    # (4*Cout, Cin) @ (Cin, TM) -> (4*Cout, TM): sub-pixel-phase major, lane-dense.
    o_ref[...] = (
        jnp.dot(w_ref[...], xt_ref[...].astype(jnp.bfloat16),
                preferred_element_type=jnp.float32)
        + b_ref[...]
    )


def _conv_block_kernel(uppad_ref, brpad_ref, w1_ref, b1_ref, w2t_ref, b2_ref,
                       wit_ref, bi_ref, o_ref, *,
                       TH, P, Q, C_up, C_br, C_mid, slope):
    """Fused FFTConvBlock (default flags): two 3x3 convs + LReLU + 2*conv1x1.

    Processes TH output rows per grid step; the padded activations stay resident
    in VMEM across row tiles (index_map ignores the row axis) and are sliced with
    a dynamic pl.ds, so cat / r1 / r2 never round-trip HBM.
    """
    Ccat = C_up + C_br
    r = pl.program_id(1)
    r0 = r * TH                                         # first output row of tile

    # cat tile with a 2-pixel halo (inputs were zero-padded by 2 in the wrapper,
    # so conv1's zero padding is already correct -- no mask needed here).
    up_t = uppad_ref[0, pl.ds(r0, TH + 4), :, :]        # (TH+4, Q+4, C_up) bf16
    br_t = brpad_ref[0, pl.ds(r0, TH + 4), :, :]        # (TH+4, Q+4, C_br) bf16
    cat_ext = jnp.concatenate([up_t, br_t], axis=-1)    # VMEM-only `cat`

    # ---- conv1: 3x3 (+LeakyReLU), produced with a 1-pixel halo for conv2 ------
    # in-VMEM im2col -> a single matmul with K = 9*Ccat (better MXU cadence).
    S1 = (TH + 2) * (Q + 2)
    p1 = jnp.concatenate(
        [cat_ext[dy:dy + TH + 2, dx:dx + Q + 2, :]
         for dy in range(3) for dx in range(3)], axis=-1)          # (TH+2, Q+2, 9*Ccat)
    r1 = jnp.dot(p1.reshape(S1, 9 * Ccat), w1_ref[...],
                 preferred_element_type=jnp.float32) + b1_ref[...]
    r1 = jnp.where(r1 > 0, r1, slope * r1).reshape(TH + 2, Q + 2, C_mid)

    # conv2 zero-pads r1: zero the halo ring that falls outside the real image.
    gr = lax.broadcasted_iota(jnp.int32, (TH + 2, Q + 2, C_mid), 0) + (r0 - 1)
    gc = lax.broadcasted_iota(jnp.int32, (TH + 2, Q + 2, C_mid), 1) - 1
    inside = (gr >= 0) & (gr < P) & (gc >= 0) & (gc < Q)
    r1 = jnp.where(inside, r1, 0.0).astype(jnp.bfloat16)

    # ---- conv2: 3x3 (+LeakyReLU), computed in (C, H*W) orientation ------------
    S2 = TH * Q
    p2 = jnp.concatenate(
        [r1[dy:dy + TH, dx:dx + Q, :] for dy in range(3) for dx in range(3)],
        axis=-1).reshape(S2, 9 * C_mid)                             # (S2, 9*C_mid)
    nt = (((1,), (1,)), ((), ()))                                   # (m,k)·(n,k) -> (m,n)
    r2_t = lax.dot_general(w2t_ref[...], p2, nt,
                           preferred_element_type=jnp.float32) + b2_ref[...]
    r2_t = jnp.where(r2_t > 0, r2_t, slope * r2_t)                  # (C_mid, S2)

    # ---- identity 1x1 conv on cat (applied twice in the torch module => 2x) ---
    cat_core = cat_ext[2:2 + TH, 2:2 + Q, :].reshape(S2, Ccat)
    idn_t = lax.dot_general(wit_ref[...], cat_core, nt,
                            preferred_element_type=jnp.float32) + bi_ref[...]

    # lane-dense store: last dim of the output block is TH*Q (>=128)
    o_ref[0] = r2_t + 2.0 * idn_t


# ----------------------------- kernel wrappers ------------------------------

def conv_transpose_2x2(x_nchw, w_up, b_up, *, m_tile=None):
    """ConvTranspose2d(k=2, s=2).  w_up: (Cin, Cout, 2, 2) torch layout, b_up: (Cout,).

    Returns `up` in NHWC, (N, 2H, 2W, Cout).
    """
    N, Cin, H, W = x_nchw.shape
    C_up = w_up.shape[1]
    M = N * H * W
    xt = jnp.transpose(x_nchw, (1, 0, 2, 3)).reshape(Cin, M)          # (Cin, M)
    wt = jnp.transpose(w_up, (2, 3, 1, 0)).reshape(4 * C_up, Cin)     # row = (dy,dx,c)
    wt = wt.astype(jnp.bfloat16)
    b4 = jnp.tile(b_up, 4).reshape(4 * C_up, 1).astype(jnp.float32)

    TM = _pick_m_tile(M) if m_tile is None else int(m_tile)
    up4 = pl.pallas_call(
        _deconv_kernel,
        out_shape=jax.ShapeDtypeStruct((4 * C_up, M), jnp.float32),
        grid=(M // TM,),
        in_specs=[
            pl.BlockSpec((Cin, TM), lambda m: (0, m)),
            pl.BlockSpec((4 * C_up, Cin), lambda m: (0, 0)),
            pl.BlockSpec((4 * C_up, 1), lambda m: (0, 0)),
        ],
        out_specs=pl.BlockSpec((4 * C_up, TM), lambda m: (0, m)),
        compiler_params=pltpu.CompilerParams(
            dimension_semantics=("parallel",),
            vmem_limit_bytes=_VMEM_LIMIT),
    )(xt, wt, b4)

    # sub-pixel (dy, dx) interleave: cheap wrapper-side XLA relayout.
    up = up4.reshape(2, 2, C_up, N, H, W).transpose(3, 4, 0, 5, 1, 2)  # (N,H,2,W,2,C)
    return up.reshape(N, 2 * H, 2 * W, C_up)


def unet_up_block_stage1(x_nchw, bridge_nchw, params, relu_slope, *, row_tile=None):
    """UNetUpBlockStage1.forward.  Inputs / output in NCHW, f32."""
    N, Cin, H, W = x_nchw.shape
    Nb, C_br, P, Q = bridge_nchw.shape
    assert Nb == N and P == 2 * H and Q == 2 * W
    C_up = params["w_up"].shape[1]
    C_mid = params["w1"].shape[0]
    Ccat = C_up + C_br
    assert params["w1"].shape[1] == Ccat, "bridge/up channels must sum to in_size"

    TH = _pick_row_tile(P, Q) if row_tile is None else int(row_tile)
    assert P % TH == 0 and TH % 2 == 0 and ((TH * Q) % 128 == 0 or TH == P), \
        f"invalid row tile {TH} for output {P}x{Q}"
    RT = P // TH

    # ---- stage 1: transposed conv (Pallas matmul, lane-dense output) ----------
    up = conv_transpose_2x2(x_nchw, params["w_up"], params["b_up"])   # (N, P, Q, C_up)

    # ---- stage 2: fused conv block --------------------------------------------
    # Pre-pad by 2 so every tile (incl. its 1-pixel r1 halo) reads correct zeros;
    # bf16 activations halve HBM traffic (accumulation stays f32 in-kernel).
    # `cat` is never materialized in HBM: it is concatenated in VMEM inside the kernel.
    up_pad = jnp.pad(up, ((0, 0), (2, 2), (2, 2), (0, 0))).astype(jnp.bfloat16)
    br_pad = jnp.pad(jnp.transpose(bridge_nchw, (0, 2, 3, 1)),
                     ((0, 0), (2, 2), (2, 2), (0, 0))).astype(jnp.bfloat16)

    # weights: bf16 for the MXU, laid out for the in-kernel im2col orderings
    w1 = jnp.transpose(params["w1"], (2, 3, 1, 0)).reshape(9 * Ccat, C_mid)
    w1 = w1.astype(jnp.bfloat16)                                      # (9*Ccat, C_mid)
    b1 = params["b1"].reshape(1, C_mid).astype(jnp.float32)
    w2t = jnp.transpose(params["w2"], (0, 2, 3, 1)).reshape(C_mid, 9 * C_mid)
    w2t = w2t.astype(jnp.bfloat16)                                    # (C_mid, 9*C_mid)
    b2 = params["b2"].reshape(C_mid, 1).astype(jnp.float32)
    wit = params["wi"][:, :, 0, 0].astype(jnp.bfloat16)               # (C_mid, Ccat)
    bi = params["bi"].reshape(C_mid, 1).astype(jnp.float32)

    kern = functools.partial(_conv_block_kernel, TH=TH, P=P, Q=Q,
                             C_up=C_up, C_br=C_br, C_mid=C_mid,
                             slope=float(relu_slope))
    out_flat = pl.pallas_call(
        kern,
        out_shape=jax.ShapeDtypeStruct((N, C_mid, P * Q), jnp.float32),
        grid=(N, RT),
        in_specs=[
            # activations: full padded image resident per batch; row tiles slice it
            pl.BlockSpec((1, P + 4, Q + 4, C_up), lambda n, r: (n, 0, 0, 0)),
            pl.BlockSpec((1, P + 4, Q + 4, C_br), lambda n, r: (n, 0, 0, 0)),
            # weights / biases: resident across the whole grid
            pl.BlockSpec((9 * Ccat, C_mid), lambda n, r: (0, 0)),
            pl.BlockSpec((1, C_mid), lambda n, r: (0, 0)),
            pl.BlockSpec((C_mid, 9 * C_mid), lambda n, r: (0, 0)),
            pl.BlockSpec((C_mid, 1), lambda n, r: (0, 0)),
            pl.BlockSpec((C_mid, Ccat), lambda n, r: (0, 0)),
            pl.BlockSpec((C_mid, 1), lambda n, r: (0, 0)),
        ],
        out_specs=pl.BlockSpec((1, C_mid, TH * Q), lambda n, r: (n, 0, r)),
        compiler_params=pltpu.CompilerParams(
            dimension_semantics=("parallel", "parallel"),
            vmem_limit_bytes=_VMEM_LIMIT),
    )(up_pad, br_pad, w1, b1, w2t, b2, wit, bi)

    return out_flat.reshape(N, C_mid, P, Q)         # already NCHW: reshape only


def init_params(key, in_size, out_size):
    ks = jax.random.split(key, 8)
    s = 0.1
    return dict(
        w_up=s * jax.random.normal(ks[0], (in_size, out_size, 2, 2), jnp.float32),
        b_up=s * jax.random.normal(ks[1], (out_size,), jnp.float32),
        w1=s * jax.random.normal(ks[2], (out_size, in_size, 3, 3), jnp.float32),
        b1=s * jax.random.normal(ks[3], (out_size,), jnp.float32),
        w2=s * jax.random.normal(ks[4], (out_size, out_size, 3, 3), jnp.float32),
        b2=s * jax.random.normal(ks[5], (out_size,), jnp.float32),
        wi=s * jax.random.normal(ks[6], (out_size, in_size, 1, 1), jnp.float32),
        bi=s * jax.random.normal(ks[7], (out_size,), jnp.float32),
    )


# ------------------------- pure-JAX (lax) f32 reference ----------------------

def ref_forward(x, bridge, p, slope):
    dn = ('NCHW', 'OIHW', 'NCHW')
    # ConvTranspose2d(k=2,s=2) == conv with lhs_dilation=2, pad=1, flipped kernel.
    w_t = jnp.transpose(jnp.flip(p["w_up"], (2, 3)), (1, 0, 2, 3))
    up = lax.conv_general_dilated(x, w_t, (1, 1), ((1, 1), (1, 1)),
                                  lhs_dilation=(2, 2), dimension_numbers=dn,
                                  precision=HIGHEST)
    up = up + p["b_up"][None, :, None, None]
    cat = jnp.concatenate([up, bridge], axis=1)

    def conv(z, w, b, pad):
        y = lax.conv_general_dilated(z, w, (1, 1), ((pad, pad), (pad, pad)),
                                     dimension_numbers=dn, precision=HIGHEST)
        return y + b[None, :, None, None]

    lrelu = lambda z: jnp.where(z > 0, z, slope * z)
    r1 = lrelu(conv(cat, p["w1"], p["b1"], 1))
    r2 = lrelu(conv(r1, p["w2"], p["b2"], 1))
    idn = conv(cat, p["wi"], p["bi"], 0)
    return r2 + 2.0 * idn


# ---------------------------------- main -------------------------------------

if __name__ == "__main__":
    key = jax.random.PRNGKey(0)
    in_size, out_size = 8, 4
    relu_slope = 0.2
    N, H, W = 2, 8, 8

    kx, kb, kp = jax.random.split(key, 3)
    x = jax.random.normal(kx, (N, in_size, H, W), jnp.float32)
    # bridge has (in_size - out_size) channels so `cat` has in_size channels.
    bridge = jax.random.normal(kb, (N, in_size - out_size, 2 * H, 2 * W), jnp.float32)
    params = init_params(kp, in_size, out_size)

    ref = ref_forward(x, bridge, params, relu_slope)

    # default tiling (whole image per grid step at this tiny size)
    out = jax.block_until_ready(unet_up_block_stage1(x, bridge, params, relu_slope))
    # explicit 8-row tiles: exercises the halo / boundary-mask path of the fused kernel
    out_tiled = jax.block_until_ready(
        unet_up_block_stage1(x, bridge, params, relu_slope, row_tile=8))

    assert out.shape == ref.shape == (N, out_size, 2 * H, 2 * W), (out.shape, ref.shape)
    # bf16 matmul operands (f32 accumulation) vs f32/HIGHEST reference -> loose abs tol
    err = float(jnp.max(jnp.abs(out - ref)))
    err_t = float(jnp.max(jnp.abs(out_tiled - ref)))
    assert err < 5e-2, f"max abs err {err}"
    assert err_t < 5e-2, f"max abs err (tiled) {err_t}"

    print("KERNEL_OK")
</pallas_src>

<mosaic_0001>
module attributes {stable_mosaic.version = 11 : i64} {
  func.func @_deconv_kernel(%arg0: i32, %arg1: memref<8x128xf32, #tpu.memory_space<vmem>>, %arg2: memref<16x8xbf16, #tpu.memory_space<vmem>>, %arg3: memref<16x1xf32, #tpu.memory_space<vmem>>, %arg4: memref<16x128xf32, #tpu.memory_space<vmem>>) attributes {dimension_semantics = [#tpu.dimension_semantics<parallel>], iteration_bounds = array<i64: 1>, scalar_prefetch = 0 : i64, scratch_operands = 0 : i64, tpu.core_type = #tpu.core_type<tc>, window_params = [{transform_indices = @transform_0, window_bounds = array<i64: 8, 128>}, {pipeline_mode = #tpu.pipeline_mode<synchronous>, transform_indices = @transform_1, window_bounds = array<i64: 16, 8>}, {pipeline_mode = #tpu.pipeline_mode<synchronous>, transform_indices = @transform_2, window_bounds = array<i64: 16, 1>}, {transform_indices = @transform_3, window_bounds = array<i64: 16, 128>}]} {
    %c0 = arith.constant 0 : index
    %c0_0 = arith.constant 0 : index
    %0 = vector.load %arg2[%c0, %c0_0] : memref<16x8xbf16, #tpu.memory_space<vmem>>, vector<16x8xbf16>
    %c0_1 = arith.constant 0 : index
    %c0_2 = arith.constant 0 : index
    %1 = vector.load %arg1[%c0_1, %c0_2] : memref<8x128xf32, #tpu.memory_space<vmem>>, vector<8x128xf32>
    %2 = arith.truncf %1 : vector<8x128xf32> to vector<8x128xbf16>
    %cst = arith.constant dense<0.000000e+00> : vector<16x128xf32>
    %3 = tpu.matmul %0, %2, %cst {dimension_numbers = #tpu.dot_dimension_numbers<[1], [0], [0], [1], [0, 0, 1, 1], [], []>} : vector<16x8xbf16>, vector<8x128xbf16>, vector<16x128xf32> -> vector<16x128xf32>
    %c0_3 = arith.constant 0 : index
    %c0_4 = arith.constant 0 : index
    %4 = vector.load %arg3[%c0_3, %c0_4] : memref<16x1xf32, #tpu.memory_space<vmem>>, vector<16x1xf32>
    %5 = vector.broadcast %4 : vector<16x1xf32> to vector<16x128xf32>
    %6 = arith.addf %3, %5 : vector<16x128xf32>
    %c0_5 = arith.constant 0 : index
    %c0_6 = arith.constant 0 : index
    %7 = vector.load %arg4[%c0_5, %c0_6] : memref<16x128xf32, #tpu.memory_space<vmem>>, vector<16x128xf32>
    tpu.vector_store %arg4[%c0_5, %c0_6], %6 {strides = array<i32>} : memref<16x128xf32, #tpu.memory_space<vmem>>, vector<16x128xf32>,
    return
  }
  func.func @transform_0(%arg0: i32) -> (i32, i32) {
    %c0_i32 = arith.constant 0 : i32
    %c0_i32_0 = arith.constant 0 : i32
    return %c0_i32, %arg0 : i32, i32
  }
  func.func @transform_1(%arg0: i32) -> (i32, i32) {
    %c0_i32 = arith.constant 0 : i32
    %c0_i32_0 = arith.constant 0 : i32
    %c0_i32_1 = arith.constant 0 : i32
    return %c0_i32, %c0_i32_0 : i32, i32
  }
  func.func @transform_2(%arg0: i32) -> (i32, i32) {
    %c0_i32 = arith.constant 0 : i32
    %c0_i32_0 = arith.constant 0 : i32
    %c0_i32_1 = arith.constant 0 : i32
    return %c0_i32, %c0_i32_0 : i32, i32
  }
  func.func @transform_3(%arg0: i32) -> (i32, i32) {
    %c0_i32 = arith.constant 0 : i32
    %c0_i32_0 = arith.constant 0 : i32
    return %c0_i32, %arg0 : i32, i32
  }
}

</mosaic_0001>

<bundles_post_ra>
// kernel: tpu_custom_call.1
= control target key start
LH: loop header
LB: loop body
LE: loop exit
PB: predicated region body
PF: predicated region fallthrough
CT: control target
= control target key end

     0   :  { %vm41_vm0 = vcmask 1043456   ;;  %v144_v1 = vmov 0.0   ;;  %vm145_vm1 = vmmov 0   ;;  %v146_v4 = vmov 0   ;;  %s185_s0 = inlined_call_operand.vmem [shape: f32[8,128], index: 0, kind: input, shape index: {}]   ;;  %s186_s1 = inlined_call_operand.vmem [shape: bf16[16,8], index: 1, kind: input, shape index: {}]   ;;  %s187_s2 = inlined_call_operand.vmem [shape: f32[16,1], index: 2, kind: input, shape index: {}]   ;;  %s188_s3 = inlined_call_operand.hbm [shape: f32[16,128], index: 3, kind: output, shape index: {}]  }
   0x1   :  { %v18_v0 = vld [vmem:[%s185_s0] sm:$0xff]  ;;  %108 = vmatprep.subr.bf16.mxu0 %v144_v1  ;;  %110 = vmatprep.mubr.msk.bf16.mxu0 %vm145_vm1, %v144_v1 }
   0x2   :  { %v19_v2 = vpack.c.bf16 %v18_v0, %v18_v0  ;;  %v20_v3 = vld [vmem:[%s187_s2] sm:$0xff]  ;;  %120 = vset.pattern.permute.xlu0 %v146_v4 }
   0x3   :  { %8 = vsyncpa [#allocation3], 0  ;;  %v121_v6 = vld [vmem:[%s186_s1] sm:$0xff]   ;;  %24 = vperm.xlu0 %120, %v20_v3   ;;  %vm37_vm2 = vcmask 64512   ;;  %v21_v7 = vld [vmem:[%s187_s2 + $0x8] sm:$0xff]  ;;  %s147_s19 = smov [#allocation2]  }
   0x4   :  { %v43_v5 = vsel %vm41_vm0, %v19_v2, 0  ;;  %s93_s20 = sshll.u32 %s147_s19, 4  ;;  %s94_s20 = int_to_ptr.vmem [resolvable:$true] %s93_s20 }
   0x5   :  { %109 = vmatpush3.bf16.msra.mxu0 %v43_v5  ;;  %s122_s1 = scalar_lea.vmem %s94_s20, 256  ;;  %p127_p1 = scmp.lt.s32.totalorder %s94_s20, %s94_s20 }
   0x6   :  { %p123_p0 = scmp.ne.s32.totalorder %s94_s20, %s122_s1  ;;  %p128_p2 = scmp.lt.s32.totalorder %s122_s1, %s122_s1 }
   0x7   :  { %29 = vperm.xlu0 %120, %v21_v7  }
   0x8   :  { %111 = vmatmul.mubr.msk.bf16.vlgmr.msra.gmra.mxu0 %vm37_vm2, %v121_v6  ;;  %p129_p3 = por %p128_p2, %p127_p1 }
   0xa   :  { %p130_p4 = pnand %p129_p3, %p123_p0 }
  0x7e   :  { %v25_v8 = vpop.permute.xlu0 %24 }
  0x82   :  { %v30_v12 = vpop.permute.xlu0 %29 }
  0xc8   :  { %v79_v9 = vpop.f32.mrf.mxu0 }
  0xc9   :  { %v80_v10 = vadd.f32 %v79_v9, %v25_v8 }
  0xca   :  { %v112_v11 = vpop.f32.mrf.mxu0 }
  0xcb   :  { %86 = vst [vmem:[#allocation2] sm:$0xff] %v80_v10 }
  0xcc   :  { %v82_v13 = vpop.f32.mrf.mxu0 }
  0xcd   :  { %v83_v14 = vadd.f32 %v82_v13, %v30_v12 }
  0xce   :  { %v113_v15 = vpop.f32.mrf.mxu0 }
  0xcf   :  { %87 = vst [vmem:[#allocation2 + $0x8] sm:$0xff] %v83_v14 }
  0xd0   :  { %133 = shalt.err (!%p130_p4)
}
  0xd1   :  { %s148_s2 = smov 128   ;;  %s149_s21 = smov 8  }
  0xd2   :  { %99 = dma.vmem_to_hbm [thread:$0]  %s94_s20, 256, %s188_s3, [#allocation3], %s148_s2, %s148_s2, %s149_s21  }
  0xd3   :  { %142 = dma.done.wait [#allocation3], 256  }
  0xd4   :  { %143 = vsyncadd [#allocation3], 4294967040 }
  0xd5   :  { %103 = vsyncpa [#allocation3], 1 }

</bundles_post_ra>
